<compile_context>
chip_gen: v7x
topology: tpu7x:2x2x1
jax: 0.10.0
libtpu: 0.0.40
codegen_flags: <defaults>
</compile_context>

<pallas_src>
import functools

import jax
import jax.numpy as jnp
from jax.experimental import pallas as pl
from jax.experimental.pallas import tpu as pltpu


def _round_up(v, m):
    return ((v + m - 1) // m) * m


def _ca_layer_kernel(x_ref, w1t_ref, b1_ref, w2t_ref, b2_ref, o_ref, acc_ref,
                     *, n_valid, tile_n, fold, c_out):
    # x_ref:   (tB, tN, C_f)  current (possibly channel-folded) input tile
    # w1t_ref: (C, H)         fc1 weight, pre-transposed (in, out)
    # b1_ref:  (1, H)
    # w2t_ref: (H, C)         fc2 weight, pre-transposed (in, out)
    # b2_ref:  (1, C)
    # o_ref:   (tB, 1, C)     output block (resident across the N axis)
    # acc_ref: (tB, C_f)      running max accumulator (VMEM scratch)
    n = pl.program_id(1)
    last = pl.num_programs(1) - 1

    @pl.when(n == 0)
    def _init():
        acc_ref[...] = jnp.full(acc_ref.shape, -jnp.inf, dtype=acc_ref.dtype)

    def _update(mask_tail):
        x = x_ref[...].astype(acc_ref.dtype)
        if mask_tail:
            row = jax.lax.broadcasted_iota(jnp.int32, x.shape, 1) + n * tile_n
            x = jnp.where(row < n_valid, x, -jnp.inf)
        # One XLU reduce per tile, then a VPU running max.
        acc_ref[...] = jnp.maximum(acc_ref[...], jnp.max(x, axis=1))

    if n_valid % tile_n != 0:
        # Only the final N tile has padded rows: keep the iota/compare/select
        # out of the steady-state loop.
        @pl.when(n != last)
        def _steady():
            _update(False)

        @pl.when(n == last)
        def _tail():
            _update(True)
    else:
        _update(False)

    @pl.when(n == last)
    def _finalize():
        # Undo channel folding with `fold` lane-slice loads + maximums
        # (runs once per batch tile; avoids an in-kernel reshape).
        y = acc_ref[:, 0:c_out].astype(jnp.float32)                     # (tB, C)
        for i in range(1, fold):
            y = jnp.maximum(
                y, acc_ref[:, i * c_out:(i + 1) * c_out].astype(jnp.float32))
        h = jnp.dot(y, w1t_ref[...], preferred_element_type=jnp.float32)  # (tB, H)
        h = jnp.maximum(h + b1_ref[...], 0.0)
        out = jnp.dot(h, w2t_ref[...], preferred_element_type=jnp.float32)
        out = out + b2_ref[...]                                           # (tB, C)
        o_ref[...] = out[:, None, :].astype(o_ref.dtype)


def _tpu_vmem_caps():
    """Return (per-x-buffer budget bytes, scoped-VMEM cap bytes), generation aware."""
    phys = 128 << 20
    try:
        phys = int(pltpu.get_tpu_info().vmem_capacity_bytes)
    except Exception:
        pass
    if phys <= (64 << 20):
        # v7x-class: 64 MiB physical VMEM. ~5 MiB tiles are already far past
        # the per-step amortization knee; cap scoped VMEM at ~80% of physical.
        return 5 << 20, int(phys * 0.8)
    # v5e / v6e: 128 MiB physical — keep larger tiles for very long N.
    return 8 << 20, min(96 << 20, int(phys * 0.75))


def _choose_tb(B):
    """Pick a batch tile so the 'parallel' axis has >= 2 blocks whenever B >= 2
    (keeps both v7x TensorCores streaming x)."""
    if B >= 16 and B % 8 == 0:
        return 8
    for tb in (4, 2, 1):
        if B % tb == 0 and B // tb >= 2:
            return tb
    return B  # B == 1


def ca_layer(x, w1, b1, w2, b2):
    """CALayer forward. x: (B, N, C) -> (B, 1, C).

    w1: (H, C), b1: (H,), w2: (C, H), b2: (C,)  (PyTorch Linear layout).
    Output dtype follows x.dtype (bf16 in -> bf16 out).
    """
    B, N, C = x.shape
    H = w1.shape[0]
    itemsize = jnp.dtype(x.dtype).itemsize
    lane = 128
    sub = max(8, 32 // itemsize)           # sublane multiple for x.dtype

    # One-time wrapper-side layout plumbing: transpose weights so the kernel
    # contracts on contiguous axes with no in-kernel XLU transpose.
    w1t = jnp.asarray(w1, jnp.float32).T          # (C, H)
    w2t = jnp.asarray(w2, jnp.float32).T          # (H, C)
    b1_2d = jnp.asarray(b1, jnp.float32).reshape(1, H)
    b2_2d = jnp.asarray(b2, jnp.float32).reshape(1, C)

    # Channel folding: for C < 128 fold k consecutive N rows into the lane dim
    # ((B,N,C) -> (B,N/k,k*C) is a free reshape on a contiguous array) so the
    # streamed max uses dense vregs and the VMEM tile math is honest.
    fold, N_f, C_f, x_in = 1, N, C, x
    if C < lane and lane % C == 0:
        k = lane // C
        if N % k == 0:
            fold, N_f, C_f = k, N // k, C * k
            x_in = x.reshape(B, N_f, C_f)
    # TODO(synk): if N % k != 0, folding would need a padded copy of x; we fall
    # back to the un-folded (lane-padded) path instead.

    tB = _choose_tb(B)

    # Per-buffer budget and scoped-VMEM cap, with lane/sublane layout padding.
    x_budget, vmem_cap = _tpu_vmem_caps()
    C_pad = _round_up(C_f, lane)
    w_pad_bytes = (_round_up(C, 8) * _round_up(H, lane)
                   + 8 * _round_up(H, lane)
                   + _round_up(H, 8) * _round_up(C, lane)
                   + 8 * _round_up(C, lane)) * 4
    x_budget = min(x_budget,
                   max(1 << 20, (vmem_cap - 2 * w_pad_bytes - (4 << 20)) // 2))
    max_tn = max(sub, x_budget // max(1, tB * C_pad * itemsize))
    if N_f <= max_tn:
        tN = N_f
    else:
        tN = max(sub, (max_tn // sub) * sub)

    grid = (B // tB, pl.cdiv(N_f, tN))

    acc_dtype = jnp.bfloat16 if x.dtype == jnp.bfloat16 else jnp.float32
    tN_pad = _round_up(tN, sub)
    vmem_need = (2 * tB * tN_pad * C_pad * itemsize                    # x, 2 bufs
                 + 2 * w_pad_bytes                                     # weights (worst case)
                 + 2 * tB * 8 * _round_up(C, lane) * itemsize          # output block
                 + _round_up(tB, 8) * C_pad * jnp.dtype(acc_dtype).itemsize
                 + (2 << 20))                                          # headroom
    vmem_limit = int(min(max(vmem_need, 4 << 20), vmem_cap))

    cost = pl.CostEstimate(
        flops=4 * B * C * H,                     # two (B,C)x(C,H)-class matmuls
        transcendentals=0,
        bytes_accessed=(B * N * C * itemsize     # dominant: streaming x
                        + w_pad_bytes
                        + B * C * itemsize),
    )

    kernel = functools.partial(_ca_layer_kernel, n_valid=N_f, tile_n=tN,
                               fold=fold, c_out=C)

    def _run(single_buffer_weights):
        w_kw = {}
        if single_buffer_weights:
            # Constant-index weights never change across the grid: keep a
            # single VMEM copy instead of the default double buffer.
            w_kw = dict(pipeline_mode=pl.Buffered(1))
        in_specs = [
            pl.BlockSpec((tB, tN, C_f), lambda b, n: (b, n, 0)),        # x (streamed)
            pl.BlockSpec((C, H), lambda b, n: (0, 0), **w_kw),          # W1^T
            pl.BlockSpec((1, H), lambda b, n: (0, 0), **w_kw),          # b1
            pl.BlockSpec((H, C), lambda b, n: (0, 0), **w_kw),          # W2^T
            pl.BlockSpec((1, C), lambda b, n: (0, 0), **w_kw),          # b2
        ]
        return pl.pallas_call(
            kernel,
            out_shape=jax.ShapeDtypeStruct((B, 1, C), x.dtype),
            grid=grid,
            in_specs=in_specs,
            out_specs=pl.BlockSpec((tB, 1, C), lambda b, n: (b, 0, 0)),  # resident over n
            scratch_shapes=[pltpu.VMEM((tB, C_f), acc_dtype)],           # running max
            compiler_params=pltpu.CompilerParams(
                dimension_semantics=("parallel", "arbitrary"),
                vmem_limit_bytes=vmem_limit,
            ),
            cost_estimate=cost,
        )(x_in, w1t, b1_2d, w2t, b2_2d)

    try:
        return _run(True)
    except Exception:
        # pipeline_mode / pl.Buffered(1) unsupported on this jax version:
        # fall back to default double-buffered weights (identical semantics).
        return _run(False)


def ca_layer_ref(x, w1, b1, w2, b2):
    """Pure-JAX reference mirroring the PyTorch module."""
    y = jnp.max(x, axis=1)                       # (B, C)
    h = jnp.maximum(y @ w1.T + b1, 0.0)          # (B, H)
    out = h @ w2.T + b2                          # (B, C)
    return out[:, None, :]                       # (B, 1, C)


if __name__ == "__main__":
    # Small shapes consistent with the module: dim_ca = C, reduction_ca = 4.
    B, N, C = 2, 8, 32
    reduction_ca = 4
    H = C // reduction_ca

    key = jax.random.PRNGKey(0)
    kx, kw1, kb1, kw2, kb2 = jax.random.split(key, 5)

    x = jax.random.normal(kx, (B, N, C), dtype=jnp.float32)
    # PyTorch Linear stores W as (out_features, in_features).
    w1 = jax.random.normal(kw1, (H, C), dtype=jnp.float32) * 0.1
    b1 = jax.random.normal(kb1, (H,), dtype=jnp.float32) * 0.1
    w2 = jax.random.normal(kw2, (C, H), dtype=jnp.float32) * 0.1
    b2 = jax.random.normal(kb2, (C,), dtype=jnp.float32) * 0.1

    out = jax.block_until_ready(ca_layer(x, w1, b1, w2, b2))
    ref = ca_layer_ref(x, w1, b1, w2, b2)

    assert out.shape == (B, 1, C), out.shape
    assert jnp.allclose(out, ref, atol=1e-5, rtol=1e-5), "mismatch vs reference"

    # TODO(synk): at these tiny demo shapes a standalone pallas_call is pure
    # launch overhead; in a real model, fuse CALayer into the producing kernel
    # or batch many instances per call.
    print("KERNEL_OK")
</pallas_src>

<mosaic_0001>
module attributes {stable_mosaic.version = 11 : i64} {
  func.func @_ca_layer_kernel(%arg0: i32, %arg1: i32, %arg2: memref<1x2x128xf32, #tpu.memory_space<vmem>>, %arg3: memref<32x8xf32, #tpu.memory_space<vmem>>, %arg4: memref<1x8xf32, #tpu.memory_space<vmem>>, %arg5: memref<8x32xf32, #tpu.memory_space<vmem>>, %arg6: memref<1x32xf32, #tpu.memory_space<vmem>>, %arg7: memref<1x1x32xf32, #tpu.memory_space<vmem>>, %arg8: memref<1x128xf32, #tpu.memory_space<vmem>>) attributes {dimension_semantics = [#tpu.dimension_semantics<parallel>, #tpu.dimension_semantics<arbitrary>], iteration_bounds = array<i64: 2, 1>, scalar_prefetch = 0 : i64, scratch_operands = 1 : i64, tpu.core_type = #tpu.core_type<tc>, window_params = [{transform_indices = @transform_0, window_bounds = array<i64: 1, 2, 128>}, {pipeline_mode = #tpu.pipeline_mode<synchronous>, transform_indices = @transform_1, window_bounds = array<i64: 32, 8>}, {pipeline_mode = #tpu.pipeline_mode<synchronous>, transform_indices = @transform_2, window_bounds = array<i64: 1, 8>}, {pipeline_mode = #tpu.pipeline_mode<synchronous>, transform_indices = @transform_3, window_bounds = array<i64: 8, 32>}, {pipeline_mode = #tpu.pipeline_mode<synchronous>, transform_indices = @transform_4, window_bounds = array<i64: 1, 32>}, {transform_indices = @transform_5, window_bounds = array<i64: 1, 1, 32>}]} {
    %c0_i32 = arith.constant 0 : i32
    %0 = arith.cmpi eq, %arg1, %c0_i32 : i32
    %1 = arith.extui %0 : i1 to i32
    %c0_i32_0 = arith.constant 0 : i32
    %2 = arith.cmpi ne, %1, %c0_i32_0 : i32
    scf.if %2 {
      %cst_9 = arith.constant 0xFF800000 : f32
      %11 = vector.broadcast %cst_9 : f32 to vector<1x128xf32>
      %c0_10 = arith.constant 0 : index
      %c0_11 = arith.constant 0 : index
      %12 = vector.load %arg8[%c0_10, %c0_11] : memref<1x128xf32, #tpu.memory_space<vmem>>, vector<1x128xf32>
      tpu.vector_store %arg8[%c0_10, %c0_11], %11 {strides = array<i32>} : memref<1x128xf32, #tpu.memory_space<vmem>>, vector<1x128xf32>,
    } else {
    }
    %c0 = arith.constant 0 : index
    %c0_1 = arith.constant 0 : index
    %c0_2 = arith.constant 0 : index
    %3 = vector.load %arg2[%c0, %c0_1, %c0_2] : memref<1x2x128xf32, #tpu.memory_space<vmem>>, vector<1x2x128xf32>
    %c0_3 = arith.constant 0 : index
    %c0_4 = arith.constant 0 : index
    %4 = vector.load %arg8[%c0_3, %c0_4] : memref<1x128xf32, #tpu.memory_space<vmem>>, vector<1x128xf32>
    %cst = arith.constant dense<0xFF800000> : vector<1x128xf32>
    %5 = vector.multi_reduction <maximumf>, %3, %cst [1] : vector<1x2x128xf32> to vector<1x128xf32>
    %6 = arith.maximumf %4, %5 : vector<1x128xf32>
    %c0_5 = arith.constant 0 : index
    %c0_6 = arith.constant 0 : index
    %7 = vector.load %arg8[%c0_5, %c0_6] : memref<1x128xf32, #tpu.memory_space<vmem>>, vector<1x128xf32>
    tpu.vector_store %arg8[%c0_5, %c0_6], %6 {strides = array<i32>} : memref<1x128xf32, #tpu.memory_space<vmem>>, vector<1x128xf32>,
    %c0_i32_7 = arith.constant 0 : i32
    %8 = arith.cmpi eq, %arg1, %c0_i32_7 : i32
    %9 = arith.extui %8 : i1 to i32
    %c0_i32_8 = arith.constant 0 : i32
    %10 = arith.cmpi ne, %9, %c0_i32_8 : i32
    scf.if %10 {
      %c0_9 = arith.constant 0 : index
      %c0_10 = arith.constant 0 : index
      %11 = vector.load %arg8[%c0_9, %c0_10] : memref<1x128xf32, #tpu.memory_space<vmem>>, vector<1x32xf32>
      %c0_11 = arith.constant 0 : index
      %c32 = arith.constant 32 : index
      %12 = vector.load %arg8[%c0_11, %c32] : memref<1x128xf32, #tpu.memory_space<vmem>>, vector<1x32xf32>
      %13 = arith.maximumf %11, %12 : vector<1x32xf32>
      %c0_12 = arith.constant 0 : index
      %c64 = arith.constant 64 : index
      %14 = vector.load %arg8[%c0_12, %c64] : memref<1x128xf32, #tpu.memory_space<vmem>>, vector<1x32xf32>
      %15 = arith.maximumf %13, %14 : vector<1x32xf32>
      %c0_13 = arith.constant 0 : index
      %c96 = arith.constant 96 : index
      %16 = vector.load %arg8[%c0_13, %c96] : memref<1x128xf32, #tpu.memory_space<vmem>>, vector<1x32xf32>
      %17 = arith.maximumf %15, %16 : vector<1x32xf32>
      %c0_14 = arith.constant 0 : index
      %c0_15 = arith.constant 0 : index
      %18 = vector.load %arg3[%c0_14, %c0_15] : memref<32x8xf32, #tpu.memory_space<vmem>>, vector<32x8xf32>
      %cst_16 = arith.constant dense<0.000000e+00> : vector<1x8xf32>
      %19 = tpu.matmul %17, %18, %cst_16 {dimension_numbers = #tpu.dot_dimension_numbers<[1], [0], [0], [1], [0, 0, 1, 1], [], []>} : vector<1x32xf32>, vector<32x8xf32>, vector<1x8xf32> -> vector<1x8xf32>
      %c0_17 = arith.constant 0 : index
      %c0_18 = arith.constant 0 : index
      %20 = vector.load %arg4[%c0_17, %c0_18] : memref<1x8xf32, #tpu.memory_space<vmem>>, vector<1x8xf32>
      %21 = arith.addf %19, %20 : vector<1x8xf32>
      %cst_19 = arith.constant 0.000000e+00 : f32
      %22 = vector.broadcast %cst_19 : f32 to vector<1x8xf32>
      %23 = arith.maximumf %21, %22 : vector<1x8xf32>
      %c0_20 = arith.constant 0 : index
      %c0_21 = arith.constant 0 : index
      %24 = vector.load %arg5[%c0_20, %c0_21] : memref<8x32xf32, #tpu.memory_space<vmem>>, vector<8x32xf32>
      %cst_22 = arith.constant dense<0.000000e+00> : vector<1x32xf32>
      %25 = tpu.matmul %23, %24, %cst_22 {dimension_numbers = #tpu.dot_dimension_numbers<[1], [0], [0], [1], [0, 0, 1, 1], [], []>} : vector<1x8xf32>, vector<8x32xf32>, vector<1x32xf32> -> vector<1x32xf32>
      %c0_23 = arith.constant 0 : index
      %c0_24 = arith.constant 0 : index
      %26 = vector.load %arg6[%c0_23, %c0_24] : memref<1x32xf32, #tpu.memory_space<vmem>>, vector<1x32xf32>
      %27 = arith.addf %25, %26 : vector<1x32xf32>
      %28 = vector.shape_cast %27 : vector<1x32xf32> to vector<1x1x32xf32>
      %c0_25 = arith.constant 0 : index
      %c0_26 = arith.constant 0 : index
      %c0_27 = arith.constant 0 : index
      %29 = vector.load %arg7[%c0_25, %c0_26, %c0_27] : memref<1x1x32xf32, #tpu.memory_space<vmem>>, vector<1x1x32xf32>
      tpu.vector_store %arg7[%c0_25, %c0_26, %c0_27], %28 {strides = array<i32>} : memref<1x1x32xf32, #tpu.memory_space<vmem>>, vector<1x1x32xf32>,
    } else {
    }
    return
  }
  func.func @transform_0(%arg0: i32, %arg1: i32) -> (i32, i32, i32) {
    %c0_i32 = arith.constant 0 : i32
    %c0_i32_0 = arith.constant 0 : i32
    return %arg0, %arg1, %c0_i32 : i32, i32, i32
  }
  func.func @transform_1(%arg0: i32, %arg1: i32) -> (i32, i32) {
    %c0_i32 = arith.constant 0 : i32
    %c0_i32_0 = arith.constant 0 : i32
    %c0_i32_1 = arith.constant 0 : i32
    return %c0_i32, %c0_i32_0 : i32, i32
  }
  func.func @transform_2(%arg0: i32, %arg1: i32) -> (i32, i32) {
    %c0_i32 = arith.constant 0 : i32
    %c0_i32_0 = arith.constant 0 : i32
    %c0_i32_1 = arith.constant 0 : i32
    return %c0_i32, %c0_i32_0 : i32, i32
  }
  func.func @transform_3(%arg0: i32, %arg1: i32) -> (i32, i32) {
    %c0_i32 = arith.constant 0 : i32
    %c0_i32_0 = arith.constant 0 : i32
    %c0_i32_1 = arith.constant 0 : i32
    return %c0_i32, %c0_i32_0 : i32, i32
  }
  func.func @transform_4(%arg0: i32, %arg1: i32) -> (i32, i32) {
    %c0_i32 = arith.constant 0 : i32
    %c0_i32_0 = arith.constant 0 : i32
    %c0_i32_1 = arith.constant 0 : i32
    return %c0_i32, %c0_i32_0 : i32, i32
  }
  func.func @transform_5(%arg0: i32, %arg1: i32) -> (i32, i32, i32) {
    %c0_i32 = arith.constant 0 : i32
    %c0_i32_0 = arith.constant 0 : i32
    %c0_i32_1 = arith.constant 0 : i32
    return %arg0, %c0_i32, %c0_i32_0 : i32, i32, i32
  }
}

module attributes {stable_mosaic.version = 11 : i64} {
  func.func @_ca_layer_kernel(%arg0: i32, %arg1: i32, %arg2: memref<1x2x128xf32, #tpu.memory_space<vmem>>, %arg3: memref<32x8xf32, #tpu.memory_space<vmem>>, %arg4: memref<1x8xf32, #tpu.memory_space<vmem>>, %arg5: memref<8x32xf32, #tpu.memory_space<vmem>>, %arg6: memref<1x32xf32, #tpu.memory_space<vmem>>, %arg7: memref<1x1x32xf32, #tpu.memory_space<vmem>>, %arg8: memref<1x128xf32, #tpu.memory_space<vmem>>) attributes {dimension_semantics = [#tpu.dimension_semantics<parallel>, #tpu.dimension_semantics<arbitrary>], iteration_bounds = array<i64: 2, 1>, scalar_prefetch = 0 : i64, scratch_operands = 1 : i64, tpu.core_type = #tpu.core_type<tc>, window_params = [{transform_indices = @transform_0, window_bounds = array<i64: 1, 2, 128>}, {pipeline_mode = #tpu.pipeline_mode<synchronous>, transform_indices = @transform_1, window_bounds = array<i64: 32, 8>}, {pipeline_mode = #tpu.pipeline_mode<synchronous>, transform_indices = @transform_2, window_bounds = array<i64: 1, 8>}, {pipeline_mode = #tpu.pipeline_mode<synchronous>, transform_indices = @transform_3, window_bounds = array<i64: 8, 32>}, {pipeline_mode = #tpu.pipeline_mode<synchronous>, transform_indices = @transform_4, window_bounds = array<i64: 1, 32>}, {transform_indices = @transform_5, window_bounds = array<i64: 1, 1, 32>}]} {
    %c0_i32 = arith.constant 0 : i32
    %0 = arith.cmpi eq, %arg1, %c0_i32 : i32
    %1 = arith.extui %0 : i1 to i32
    %c0_i32_0 = arith.constant 0 : i32
    %2 = arith.cmpi ne, %1, %c0_i32_0 : i32
    scf.if %2 {
      %cst_9 = arith.constant 0xFF800000 : f32
      %11 = vector.broadcast %cst_9 : f32 to vector<1x128xf32>
      %c0_10 = arith.constant 0 : index
      %c0_11 = arith.constant 0 : index
      %12 = vector.load %arg8[%c0_10, %c0_11] : memref<1x128xf32, #tpu.memory_space<vmem>>, vector<1x128xf32>
      tpu.vector_store %arg8[%c0_10, %c0_11], %11 {strides = array<i32>} : memref<1x128xf32, #tpu.memory_space<vmem>>, vector<1x128xf32>,
    } else {
    }
    %c0 = arith.constant 0 : index
    %c0_1 = arith.constant 0 : index
    %c0_2 = arith.constant 0 : index
    %3 = vector.load %arg2[%c0, %c0_1, %c0_2] : memref<1x2x128xf32, #tpu.memory_space<vmem>>, vector<1x2x128xf32>
    %c0_3 = arith.constant 0 : index
    %c0_4 = arith.constant 0 : index
    %4 = vector.load %arg8[%c0_3, %c0_4] : memref<1x128xf32, #tpu.memory_space<vmem>>, vector<1x128xf32>
    %cst = arith.constant dense<0xFF800000> : vector<1x128xf32>
    %5 = vector.multi_reduction <maximumf>, %3, %cst [1] : vector<1x2x128xf32> to vector<1x128xf32>
    %6 = arith.maximumf %4, %5 : vector<1x128xf32>
    %c0_5 = arith.constant 0 : index
    %c0_6 = arith.constant 0 : index
    %7 = vector.load %arg8[%c0_5, %c0_6] : memref<1x128xf32, #tpu.memory_space<vmem>>, vector<1x128xf32>
    tpu.vector_store %arg8[%c0_5, %c0_6], %6 {strides = array<i32>} : memref<1x128xf32, #tpu.memory_space<vmem>>, vector<1x128xf32>,
    %c0_i32_7 = arith.constant 0 : i32
    %8 = arith.cmpi eq, %arg1, %c0_i32_7 : i32
    %9 = arith.extui %8 : i1 to i32
    %c0_i32_8 = arith.constant 0 : i32
    %10 = arith.cmpi ne, %9, %c0_i32_8 : i32
    scf.if %10 {
      %c0_9 = arith.constant 0 : index
      %c0_10 = arith.constant 0 : index
      %11 = vector.load %arg8[%c0_9, %c0_10] : memref<1x128xf32, #tpu.memory_space<vmem>>, vector<1x32xf32>
      %c0_11 = arith.constant 0 : index
      %c32 = arith.constant 32 : index
      %12 = vector.load %arg8[%c0_11, %c32] : memref<1x128xf32, #tpu.memory_space<vmem>>, vector<1x32xf32>
      %13 = arith.maximumf %11, %12 : vector<1x32xf32>
      %c0_12 = arith.constant 0 : index
      %c64 = arith.constant 64 : index
      %14 = vector.load %arg8[%c0_12, %c64] : memref<1x128xf32, #tpu.memory_space<vmem>>, vector<1x32xf32>
      %15 = arith.maximumf %13, %14 : vector<1x32xf32>
      %c0_13 = arith.constant 0 : index
      %c96 = arith.constant 96 : index
      %16 = vector.load %arg8[%c0_13, %c96] : memref<1x128xf32, #tpu.memory_space<vmem>>, vector<1x32xf32>
      %17 = arith.maximumf %15, %16 : vector<1x32xf32>
      %c0_14 = arith.constant 0 : index
      %c0_15 = arith.constant 0 : index
      %18 = vector.load %arg3[%c0_14, %c0_15] : memref<32x8xf32, #tpu.memory_space<vmem>>, vector<32x8xf32>
      %cst_16 = arith.constant dense<0.000000e+00> : vector<1x8xf32>
      %19 = tpu.matmul %17, %18, %cst_16 {dimension_numbers = #tpu.dot_dimension_numbers<[1], [0], [0], [1], [0, 0, 1, 1], [], []>} : vector<1x32xf32>, vector<32x8xf32>, vector<1x8xf32> -> vector<1x8xf32>
      %c0_17 = arith.constant 0 : index
      %c0_18 = arith.constant 0 : index
      %20 = vector.load %arg4[%c0_17, %c0_18] : memref<1x8xf32, #tpu.memory_space<vmem>>, vector<1x8xf32>
      %21 = arith.addf %19, %20 : vector<1x8xf32>
      %cst_19 = arith.constant 0.000000e+00 : f32
      %22 = vector.broadcast %cst_19 : f32 to vector<1x8xf32>
      %23 = arith.maximumf %21, %22 : vector<1x8xf32>
      %c0_20 = arith.constant 0 : index
      %c0_21 = arith.constant 0 : index
      %24 = vector.load %arg5[%c0_20, %c0_21] : memref<8x32xf32, #tpu.memory_space<vmem>>, vector<8x32xf32>
      %cst_22 = arith.constant dense<0.000000e+00> : vector<1x32xf32>
      %25 = tpu.matmul %23, %24, %cst_22 {dimension_numbers = #tpu.dot_dimension_numbers<[1], [0], [0], [1], [0, 0, 1, 1], [], []>} : vector<1x8xf32>, vector<8x32xf32>, vector<1x32xf32> -> vector<1x32xf32>
      %c0_23 = arith.constant 0 : index
      %c0_24 = arith.constant 0 : index
      %26 = vector.load %arg6[%c0_23, %c0_24] : memref<1x32xf32, #tpu.memory_space<vmem>>, vector<1x32xf32>
      %27 = arith.addf %25, %26 : vector<1x32xf32>
      %28 = vector.shape_cast %27 : vector<1x32xf32> to vector<1x1x32xf32>
      %c0_25 = arith.constant 0 : index
      %c0_26 = arith.constant 0 : index
      %c0_27 = arith.constant 0 : index
      %29 = vector.load %arg7[%c0_25, %c0_26, %c0_27] : memref<1x1x32xf32, #tpu.memory_space<vmem>>, vector<1x1x32xf32>
      tpu.vector_store %arg7[%c0_25, %c0_26, %c0_27], %28 {strides = array<i32>} : memref<1x1x32xf32, #tpu.memory_space<vmem>>, vector<1x1x32xf32>,
    } else {
    }
    return
  }
  func.func @transform_0(%arg0: i32, %arg1: i32) -> (i32, i32, i32) {
    %c0_i32 = arith.constant 0 : i32
    %c0_i32_0 = arith.constant 0 : i32
    return %arg0, %arg1, %c0_i32 : i32, i32, i32
  }
  func.func @transform_1(%arg0: i32, %arg1: i32) -> (i32, i32) {
    %c0_i32 = arith.constant 0 : i32
    %c0_i32_0 = arith.constant 0 : i32
    %c0_i32_1 = arith.constant 0 : i32
    return %c0_i32, %c0_i32_0 : i32, i32
  }
  func.func @transform_2(%arg0: i32, %arg1: i32) -> (i32, i32) {
    %c0_i32 = arith.constant 0 : i32
    %c0_i32_0 = arith.constant 0 : i32
    %c0_i32_1 = arith.constant 0 : i32
    return %c0_i32, %c0_i32_0 : i32, i32
  }
  func.func @transform_3(%arg0: i32, %arg1: i32) -> (i32, i32) {
    %c0_i32 = arith.constant 0 : i32
    %c0_i32_0 = arith.constant 0 : i32
    %c0_i32_1 = arith.constant 0 : i32
    return %c0_i32, %c0_i32_0 : i32, i32
  }
  func.func @transform_4(%arg0: i32, %arg1: i32) -> (i32, i32) {
    %c0_i32 = arith.constant 0 : i32
    %c0_i32_0 = arith.constant 0 : i32
    %c0_i32_1 = arith.constant 0 : i32
    return %c0_i32, %c0_i32_0 : i32, i32
  }
  func.func @transform_5(%arg0: i32, %arg1: i32) -> (i32, i32, i32) {
    %c0_i32 = arith.constant 0 : i32
    %c0_i32_0 = arith.constant 0 : i32
    %c0_i32_1 = arith.constant 0 : i32
    return %arg0, %c0_i32, %c0_i32_0 : i32, i32, i32
  }
}

</mosaic_0001>

<bundles_post_ra>
// kernel: tpu_custom_call.1
= control target key start
LH: loop header
LB: loop body
LE: loop exit
PB: predicated region body
PF: predicated region fallthrough
CT: control target
= control target key end

     0   :  { %10 = vsyncpa [#allocation4], 0  ;;  %s866_s0 = inlined_call_operand.vmem [shape: f32[2,2,128], index: 0, kind: input, shape index: {}]   ;;  %s867_s1 = inlined_call_operand.vmem [shape: f32[32,8], index: 1, kind: input, shape index: {}]   ;;  %s868_s2 = inlined_call_operand.vmem [shape: f32[1,8], index: 2, kind: input, shape index: {}]   ;;  %s869_s3 = inlined_call_operand.vmem [shape: f32[8,32], index: 3, kind: input, shape index: {}]   ;;  %s870_s4 = inlined_call_operand.vmem [shape: f32[1,32], index: 4, kind: input, shape index: {}]   ;;  %s871_s5 = inlined_call_operand.hbm [shape: f32[2,1,32], index: 5, kind: output, shape index: {}]  }
   0x1   :  { %12 = vsyncpa [#allocation4 + $0x1], 0  ;;  %s733_s18 = smov 0   ;;  %s735_s19 = smov 0  }
   0x2   :  { %s737_s20 = smov 0   ;;  %s739_s21 = smov 0  }
   0x3   :  { %s741_s22 = smov 0   ;;  %s743_s23 = smov 0  }
   0x4 LB: > { %s513_s24 = sadd.s32 4294967295, %s693_s23   ;;  %s514_s25 = sadd.s32 4294967294, %s693_s23   ;;  %s693_s23 = sphi %s743_s23, %s18_s23   ;;  %s689_s22 = sphi %s741_s22, %s878_s22   ;;  %s685_s21 = sphi %s739_s21, %s877_s21   ;;  %s681_s20 = sphi %s737_s20, %s876_s20   ;;  %s677_s19 = sphi %s735_s19, %s875_s19   ;;  %s673_s18 = sphi %s733_s18, %s874_s18  }
   0x5   : > { %s30_s26 = sadd.s32 1, %s689_s22  ;;  %s149_s27 = sadd.s32 1, %s681_s20 }
   0x6   : > { %p32_p0 = scmp.ge.s32.totalorder %s30_s26, 2  ;;  %p159_p1 = scmp.ne.s32.totalorder %s681_s20, %s677_s19 }
   0x7   : > { %p160_p2 = scmp.eq.s32.totalorder %s513_s24, 1  ;;  %p165_p3 = scmp.ne.s32.totalorder %s677_s19, %s673_s18 }
   0x8   : > { %s880_s26 = smov (%p32_p0, %s30_s26), 0  ;;  %p166_p5 = scmp.eq.s32.totalorder %s514_s25, 1 }
   0x9   : > { %p773_p4 = por %p160_p2, %p159_p1  ;;  %s146_s29 = ssub.s32 %s689_s22, %s880_s26 }
   0xa   : > { %p517_p6 = scmp.ge.s32.totalorder %s693_s23, 1  ;;  %p147_p7 = scmp.eq.s32.totalorder %s146_s29, 0 }
   0xb   : > { %p780_p8 = por %p166_p5, %p165_p3  ;;  %p206_p9 = scmp.lt.s32.totalorder %s693_s23, 3 }
   0xc   : > { %s786_s6 = scalar_select %p147_p7, %s681_s20, %s149_s27  }
   0xd   : > { %p207_p10 = pnand %p517_p6, %p206_p9 }
   0xe   : > { %p235_p11 = scmp.lt.s32.totalorder (!%p207_p10), %s685_s21, 1  ;;  %v695_v0 = vmov (!%p207_p10), -inf   ;;  %vm249_vm0 = vcmask (!%p207_p10), 1041408   ;;  %v276_v7 = vld [vmem:[%s867_s1] sm:$0xff] (!%p207_p10)  ;;  %v277_v8 = vld [vmem:[%s867_s1 + $0x8] sm:$0xff] (!%p207_p10)  ;;  %v696_v12 = vmov (!%p207_p10), 0.0|0.0  }
   0xf   : > { %210 = sbr.rel (%p207_p10) target bundleno = 617 (0x269), region = 40  ;;  %246 = vst [vmem:[#allocation2] sm:$0x1] (!%p207_p10), %v695_v0  ;;  %v548_v10 = vpack.c.bf16 (!%p207_p10), %v277_v8, %v276_v7  ;;  %547 = vmatprep.subr.bf16.mxu0 (!%p207_p10), %v696_v12  ;;  %v278_v14 = vld [vmem:[%s867_s1 + $0x10] sm:$0xff] (!%p207_p10)  ;;  %v279_v15 = vld [vmem:[%s867_s1 + $0x18] sm:$0xff] (!%p207_p10)  ;;  %vm697_vm1 = vmmov (!%p207_p10), 0  }
  0x10   : > { %v551_v17 = vpack.c.bf16 (!%p207_p10), %v279_v15, %v278_v14  ;;  %v698_v18 = vmov (!%p207_p10), 0.0   ;;  %s699_s27 = smov (!%p207_p10), 96   ;;  %s700_s29 = smov (!%p207_p10), 32   ;;  %vm281_vm2 = vcmask (!%p207_p10), 261120   ;;  %v356_v26 = vld [vmem:[%s869_s3] sm:$0xff] (!%p207_p10)  ;;  %vm358_vm3 = vcmask (!%p207_p10), 64512  }
  0x11   : > { %549 = vmatpush3.bf16.msra.mxu0 (!%p207_p10), %v548_v10  ;;  %539 = vmatprep.mubr.msk.f32.mxu0 (!%p207_p10), %vm697_vm1, %v698_v18  ;;  %v280_v27 = vld [vmem:[%s868_s2] sm:$0x1] (!%p207_p10)  ;;  %s233_s12 = sand.u32 (!%p207_p10), 1, %s677_s19   ;;  %s521_s15 = sshll.u32 (!%p207_p10), %s685_s21, 4  ;;  %vm432_vm4 = vcmask (!%p207_p10), 253952  }
  0x12   : > { %550 = vmatprep.subr.bf16.mxu0 (!%p207_p10), %v696_v12  ;;  %542 = vmatprep.subr.mxu1 (!%p207_p10), %v698_v18  ;;  %v357_v32 = vld [vmem:[%s870_s4] sm:$0x1] (!%p207_p10)  ;;  %s234_s16 = scalar_lea.vmem (!%p207_p10), [#allocation3], %s233_s12 }
  0x13   : > { %544 = vmatprep.mubr.msk.f32.mxu1 (!%p207_p10), %vm697_vm1, %v698_v18  ;;  %543 = vmatpush3.msra.mxu1 (!%p207_p10), %v356_v26  ;;  %s447_s17 = sshll.u32 (!%p207_p10), %s234_s16, 4  ;;  %s821_s17 = int_to_ptr.vmem [resolvable:$true] %s447_s17 }
  0x15   : > { %552 = vmatpush3.bf16.msra.mxu0 (!%p207_p10), %v551_v17 }
  0x16   : > { %s236_s7 = scalar_select %p235_p11, %s685_s21, 1  ;;  %v248_v11 = vld [vmem:[#allocation2] sm:$0x1] }
  0x17   : > { %s702_s21 = smov [#allocation3]  }
  0x18   : > { %s518_s8 = sshll.u32 %s236_s7, 1  ;;  %s701_s7 = smov 64  }
  0x19   : > { %s241_s11 = scalar_lea.vmem %s866_s0, %s518_s8  ;;  %s619_s8 = sshll.u32 %s702_s21, 4  ;;  %s620_s8 = int_to_ptr.vmem [resolvable:$false] %s619_s8 }
  0x1a   : > { %v247_v1 = vld [vmem:[%s241_s11] sm:$0x3]  ;;  %s621_s9 = scalar_lea.vmem %s620_s8, 32  ;;  %p622_p1 = scmp.lt.s32.totalorder %s821_s17, %s620_s8 }
  0x1b   : > { %v250_v2 = vsel %vm249_vm0, %v247_v1, -inf }
  0x1c   : > { %v251_v3 = vrot.slane %v250_v2, 4 }
  0x1e   : > { %v252_v4 = vmax.f32 %v250_v2, %v251_v3 }
  0x20   : > { %v253_v5 = vrot.slane %v252_v4, 2 }
  0x22   : > { %v254_v6 = vmax.f32 %v252_v4, %v253_v5 }
  0x24   : > { %v255_v9 = vrot.slane %v254_v6, 1 }
  0x26   : > { %v256_v13 = vmax.f32 %v254_v6, %v255_v9 }
  0x28   : > { %v257_v16 = vmax.f32 %v248_v11, %v256_v13 }
  0x2a   : > { %258 = vst [vmem:[#allocation2] sm:$0x1] %v257_v16 }
  0x31   : > { %v262_v19 = vld [vmem:[#allocation2] sm:$0x1] }
  0x32   : > { %264 = vrot.lane.b32.xlu0 %v262_v19, %s699_s27  ;;  %272 = vrot.lane.b32.xlu1 %v262_v19, %s700_s29  ;;  %s819_s27 = scalar_lea.hbm %s871_s5, %s521_s15  ;;  %s435_s29 = scalar_lea.sflag [#allocation4], %s233_s12 }
  0x36   : > { %268 = vrot.lane.b32.xlu0 %v262_v19, %s701_s7  ;;  %s615_s7 = scalar_lea.vmem %s821_s17, 16 }
  0x37   : > { %p616_p12 = scmp.ne.s32.totalorder %s821_s17, %s615_s7  ;;  %p623_p2 = scmp.lt.s32.totalorder %s621_s9, %s615_s7 }
  0x39   : > { %p617_p13 = pnand %p616_p12, %p773_p4  ;;  %p624_p3 = por %p623_p2, %p622_p1 }
  0x3b   : > { %p618_p0 = pneg %p617_p13 }
  0x3d   : > { %p625_p5 = pnand %p624_p3, %p618_p0 }
  0xa4   : > { %v265_v20 = vpop.permute.xlu0 %264  ;;  %v273_v23 = vpop.permute.xlu1 %272 }
  0xa5   : > { %v267_v21 = vmax.f32 %v262_v19, %v265_v20 }
  0xa8   : > { %v269_v22 = vpop.permute.xlu0 %268 }
  0xa9   : > { %v271_v24 = vmax.f32 %v267_v21, %v269_v22 }
  0xab   : > { %v275_v25 = vmax.f32 %v271_v24, %v273_v23 }
  0xad   : > { %540 = vmatmul.mubr.msk.f32.vlgmr.msra.gmra.mrb[0].mxu0 %vm281_vm2, %v275_v25 }
 0x180   : > { %v351_v28 = vpop.f32.mrb[0].mxu0 }
 0x181   : > { %v352_v29 = vadd.f32 %v351_v28, %v280_v27  ;;  %v541_v30 = vpop.f32.mrb[1].mxu0 }
 0x183   : > { %v355_v31 = vmax.f32 %v352_v29, 0.0 }
 0x185   : > { %545 = vmatmul.mubr.msk.f32.vlgmr.msra.gmra.mrb[0].mxu1 %vm358_vm3, %v355_v31 }
 0x258   : > { %v428_v33 = vpop.f32.mrb[0].mxu1 }
 0x259   : > { %v429_v34 = vadd.f32 %v428_v33, %v357_v32  ;;  %v546_v35 = vpop.f32.mrb[1].mxu1 }
 0x25b   : > { %433 = vst.msk [vmem:[%s234_s16] sm:$0x1] %vm432_vm4, %v429_v34 }
 0x25c   : > { %628 = shalt.err (!%p625_p5)
}
 0x25d   : > { %s629_s10 = scalar_lea.hbm %s819_s27, 16  ;;  %s633_s13 = scalar_lea.hbm %s871_s5, 32 }
 0x25e   : > { %p630_p6 = scmp.ne.s32.totalorder %s819_s27, %s629_s10  ;;  %p634_p10 = scmp.lt.u32.totalorder %s819_s27, %s871_s5 }
 0x25f   : > { %p635_p11 = scmp.lt.u32.totalorder %s633_s13, %s629_s10  ;;  %p637_p13 = scmp.lt.u32.totalorder %s629_s10, %s819_s27 }
 0x260   : > { %p631_p7 = pnand %p630_p6, %p773_p4 }
 0x261   : > { %p636_p12 = por %p635_p11, %p634_p10 }
 0x262   : > { %p632_p9 = pneg %p631_p7 }
 0x263   : > { %p638_p0 = por %p637_p13, %p636_p12 }
 0x265   : > { %p639_p1 = pnand %p638_p0, %p632_p9 }
 0x267   : > { %642 = shalt.err (!%p639_p1)
}
 0x268   : > { %553 = dma.vmem_to_hbm [thread:$0]  (%p773_p4), %s821_s17, 16, %s819_s27, %s435_s29  }
 0x269 PF: > { %p559_p2 = scmp.ge.s32.totalorder %s693_s23, 2  ;;  %s459_s16 = sand.u32 1, %s673_s18  }
 0x26a   : > { %s460_s24 = scalar_lea.sflag [#allocation4], %s459_s16 }
 0x26b   : > { %p556_p3 = pnand %p559_p2, %p780_p8 }
 0x26d   : > { %668 = dma.done.wait (!%p556_p3), %s460_s24, 16  }
 0x26e   : > { %670 = vsyncadd (!%p556_p3), %s460_s24, 4294967280  ;;  %s18_s23 = sadd.s32 1, %s693_s23   ;;  %s874_s18 = smov %s677_s19 }
 0x26f   : > { %p15_p5 = scmp.ge.s32.totalorder %s18_s23, 4   ;;  %s875_s19 = smov %s681_s20 }
 0x270   : > { %s876_s20 = smov %s786_s6  ;;  %s877_s21 = smov %s689_s22 }
 0x271   : > { %s878_s22 = smov %s880_s26  ;;  %17 = sbr.rel (!%p15_p5) target bundleno = 4 (0x4), region = 83 }
 0x278   :  { %464 = vsyncpa [#allocation4], 1 }
 0x279   :  { %466 = vsyncpa [#allocation4 + $0x1], 1 }

// kernel: tpu_custom_call.1
= control target key start
LH: loop header
LB: loop body
LE: loop exit
PB: predicated region body
PF: predicated region fallthrough
CT: control target
= control target key end

     0   :  { %10 = vsyncpa [#allocation4], 0  ;;  %s866_s0 = inlined_call_operand.vmem [shape: f32[2,2,128], index: 0, kind: input, shape index: {}]   ;;  %s867_s1 = inlined_call_operand.vmem [shape: f32[32,8], index: 1, kind: input, shape index: {}]   ;;  %s868_s2 = inlined_call_operand.vmem [shape: f32[1,8], index: 2, kind: input, shape index: {}]   ;;  %s869_s3 = inlined_call_operand.vmem [shape: f32[8,32], index: 3, kind: input, shape index: {}]   ;;  %s870_s4 = inlined_call_operand.vmem [shape: f32[1,32], index: 4, kind: input, shape index: {}]   ;;  %s871_s5 = inlined_call_operand.hbm [shape: f32[2,1,32], index: 5, kind: output, shape index: {}]  }
   0x1   :  { %12 = vsyncpa [#allocation4 + $0x1], 0  ;;  %s733_s18 = smov 0   ;;  %s735_s19 = smov 0  }
   0x2   :  { %s737_s20 = smov 0   ;;  %s739_s21 = smov 0  }
   0x3   :  { %s741_s22 = smov 0   ;;  %s743_s23 = smov 0  }
   0x4 LB: > { %s513_s24 = sadd.s32 4294967295, %s693_s23   ;;  %s514_s25 = sadd.s32 4294967294, %s693_s23   ;;  %s693_s23 = sphi %s743_s23, %s18_s23   ;;  %s689_s22 = sphi %s741_s22, %s878_s22   ;;  %s685_s21 = sphi %s739_s21, %s877_s21   ;;  %s681_s20 = sphi %s737_s20, %s876_s20   ;;  %s677_s19 = sphi %s735_s19, %s875_s19   ;;  %s673_s18 = sphi %s733_s18, %s874_s18  }
   0x5   : > { %s30_s26 = sadd.s32 1, %s689_s22  ;;  %s149_s27 = sadd.s32 1, %s681_s20 }
   0x6   : > { %p32_p0 = scmp.ge.s32.totalorder %s30_s26, 2  ;;  %p159_p1 = scmp.ne.s32.totalorder %s681_s20, %s677_s19 }
   0x7   : > { %p160_p2 = scmp.eq.s32.totalorder %s513_s24, 1  ;;  %p165_p3 = scmp.ne.s32.totalorder %s677_s19, %s673_s18 }
   0x8   : > { %s880_s26 = smov (%p32_p0, %s30_s26), 0  ;;  %p166_p5 = scmp.eq.s32.totalorder %s514_s25, 1 }
   0x9   : > { %p773_p4 = por %p160_p2, %p159_p1  ;;  %s146_s29 = ssub.s32 %s689_s22, %s880_s26 }
   0xa   : > { %p517_p6 = scmp.ge.s32.totalorder %s693_s23, 1  ;;  %p147_p7 = scmp.eq.s32.totalorder %s146_s29, 0 }
   0xb   : > { %p780_p8 = por %p166_p5, %p165_p3  ;;  %p206_p9 = scmp.lt.s32.totalorder %s693_s23, 3 }
   0xc   : > { %s786_s6 = scalar_select %p147_p7, %s681_s20, %s149_s27  }
   0xd   : > { %p207_p10 = pnand %p517_p6, %p206_p9 }
   0xe   : > { %p235_p11 = scmp.lt.s32.totalorder (!%p207_p10), %s685_s21, 1  ;;  %v695_v0 = vmov (!%p207_p10), -inf   ;;  %vm249_vm0 = vcmask (!%p207_p10), 1041408   ;;  %v276_v7 = vld [vmem:[%s867_s1] sm:$0xff] (!%p207_p10)  ;;  %v277_v8 = vld [vmem:[%s867_s1 + $0x8] sm:$0xff] (!%p207_p10)  ;;  %v696_v12 = vmov (!%p207_p10), 0.0|0.0  }
   0xf   : > { %210 = sbr.rel (%p207_p10) target bundleno = 617 (0x269), region = 40  ;;  %246 = vst [vmem:[#allocation2] sm:$0x1] (!%p207_p10), %v695_v0  ;;  %v548_v10 = vpack.c.bf16 (!%p207_p10), %v277_v8, %v276_v7  ;;  %547 = vmatprep.subr.bf16.mxu0 (!%p207_p10), %v696_v12  ;;  %v278_v14 = vld [vmem:[%s867_s1 + $0x10] sm:$0xff] (!%p207_p10)  ;;  %v279_v15 = vld [vmem:[%s867_s1 + $0x18] sm:$0xff] (!%p207_p10)  ;;  %vm697_vm1 = vmmov (!%p207_p10), 0  }
  0x10   : > { %v551_v17 = vpack.c.bf16 (!%p207_p10), %v279_v15, %v278_v14  ;;  %v698_v18 = vmov (!%p207_p10), 0.0   ;;  %s699_s27 = smov (!%p207_p10), 96   ;;  %s700_s29 = smov (!%p207_p10), 32   ;;  %vm281_vm2 = vcmask (!%p207_p10), 261120   ;;  %v356_v26 = vld [vmem:[%s869_s3] sm:$0xff] (!%p207_p10)  ;;  %vm358_vm3 = vcmask (!%p207_p10), 64512  }
  0x11   : > { %549 = vmatpush3.bf16.msra.mxu0 (!%p207_p10), %v548_v10  ;;  %539 = vmatprep.mubr.msk.f32.mxu0 (!%p207_p10), %vm697_vm1, %v698_v18  ;;  %v280_v27 = vld [vmem:[%s868_s2] sm:$0x1] (!%p207_p10)  ;;  %s233_s12 = sand.u32 (!%p207_p10), 1, %s677_s19   ;;  %s521_s15 = sshll.u32 (!%p207_p10), %s685_s21, 4  ;;  %vm432_vm4 = vcmask (!%p207_p10), 253952  }
  0x12   : > { %550 = vmatprep.subr.bf16.mxu0 (!%p207_p10), %v696_v12  ;;  %542 = vmatprep.subr.mxu1 (!%p207_p10), %v698_v18  ;;  %v357_v32 = vld [vmem:[%s870_s4] sm:$0x1] (!%p207_p10)  ;;  %s234_s16 = scalar_lea.vmem (!%p207_p10), [#allocation3], %s233_s12 }
  0x13   : > { %544 = vmatprep.mubr.msk.f32.mxu1 (!%p207_p10), %vm697_vm1, %v698_v18  ;;  %543 = vmatpush3.msra.mxu1 (!%p207_p10), %v356_v26  ;;  %s447_s17 = sshll.u32 (!%p207_p10), %s234_s16, 4  ;;  %s821_s17 = int_to_ptr.vmem [resolvable:$true] %s447_s17 }
  0x15   : > { %552 = vmatpush3.bf16.msra.mxu0 (!%p207_p10), %v551_v17 }
  0x16   : > { %s236_s7 = scalar_select %p235_p11, %s685_s21, 1  ;;  %v248_v11 = vld [vmem:[#allocation2] sm:$0x1] }
  0x17   : > { %s702_s21 = smov [#allocation3]  }
  0x18   : > { %s518_s8 = sshll.u32 %s236_s7, 1  ;;  %s701_s7 = smov 64  }
  0x19   : > { %s241_s11 = scalar_lea.vmem %s866_s0, %s518_s8  ;;  %s619_s8 = sshll.u32 %s702_s21, 4  ;;  %s620_s8 = int_to_ptr.vmem [resolvable:$false] %s619_s8 }
  0x1a   : > { %v247_v1 = vld [vmem:[%s241_s11] sm:$0x3]  ;;  %s621_s9 = scalar_lea.vmem %s620_s8, 32  ;;  %p622_p1 = scmp.lt.s32.totalorder %s821_s17, %s620_s8 }
  0x1b   : > { %v250_v2 = vsel %vm249_vm0, %v247_v1, -inf }
  0x1c   : > { %v251_v3 = vrot.slane %v250_v2, 4 }
  0x1e   : > { %v252_v4 = vmax.f32 %v250_v2, %v251_v3 }
  0x20   : > { %v253_v5 = vrot.slane %v252_v4, 2 }
  0x22   : > { %v254_v6 = vmax.f32 %v252_v4, %v253_v5 }
  0x24   : > { %v255_v9 = vrot.slane %v254_v6, 1 }
  0x26   : > { %v256_v13 = vmax.f32 %v254_v6, %v255_v9 }
  0x28   : > { %v257_v16 = vmax.f32 %v248_v11, %v256_v13 }
  0x2a   : > { %258 = vst [vmem:[#allocation2] sm:$0x1] %v257_v16 }
  0x31   : > { %v262_v19 = vld [vmem:[#allocation2] sm:$0x1] }
  0x32   : > { %264 = vrot.lane.b32.xlu0 %v262_v19, %s699_s27  ;;  %272 = vrot.lane.b32.xlu1 %v262_v19, %s700_s29  ;;  %s819_s27 = scalar_lea.hbm %s871_s5, %s521_s15  ;;  %s435_s29 = scalar_lea.sflag [#allocation4], %s233_s12 }
  0x36   : > { %268 = vrot.lane.b32.xlu0 %v262_v19, %s701_s7  ;;  %s615_s7 = scalar_lea.vmem %s821_s17, 16 }
  0x37   : > { %p616_p12 = scmp.ne.s32.totalorder %s821_s17, %s615_s7  ;;  %p623_p2 = scmp.lt.s32.totalorder %s621_s9, %s615_s7 }
  0x39   : > { %p617_p13 = pnand %p616_p12, %p773_p4  ;;  %p624_p3 = por %p623_p2, %p622_p1 }
  0x3b   : > { %p618_p0 = pneg %p617_p13 }
  0x3d   : > { %p625_p5 = pnand %p624_p3, %p618_p0 }
  0xa4   : > { %v265_v20 = vpop.permute.xlu0 %264  ;;  %v273_v23 = vpop.permute.xlu1 %272 }
  0xa5   : > { %v267_v21 = vmax.f32 %v262_v19, %v265_v20 }
  0xa8   : > { %v269_v22 = vpop.permute.xlu0 %268 }
  0xa9   : > { %v271_v24 = vmax.f32 %v267_v21, %v269_v22 }
  0xab   : > { %v275_v25 = vmax.f32 %v271_v24, %v273_v23 }
  0xad   : > { %540 = vmatmul.mubr.msk.f32.vlgmr.msra.gmra.mrb[0].mxu0 %vm281_vm2, %v275_v25 }
 0x180   : > { %v351_v28 = vpop.f32.mrb[0].mxu0 }
 0x181   : > { %v352_v29 = vadd.f32 %v351_v28, %v280_v27  ;;  %v541_v30 = vpop.f32.mrb[1].mxu0 }
 0x183   : > { %v355_v31 = vmax.f32 %v352_v29, 0.0 }
 0x185   : > { %545 = vmatmul.mubr.msk.f32.vlgmr.msra.gmra.mrb[0].mxu1 %vm358_vm3, %v355_v31 }
 0x258   : > { %v428_v33 = vpop.f32.mrb[0].mxu1 }
 0x259   : > { %v429_v34 = vadd.f32 %v428_v33, %v357_v32  ;;  %v546_v35 = vpop.f32.mrb[1].mxu1 }
 0x25b   : > { %433 = vst.msk [vmem:[%s234_s16] sm:$0x1] %vm432_vm4, %v429_v34 }
 0x25c   : > { %628 = shalt.err (!%p625_p5)
}
 0x25d   : > { %s629_s10 = scalar_lea.hbm %s819_s27, 16  ;;  %s633_s13 = scalar_lea.hbm %s871_s5, 32 }
 0x25e   : > { %p630_p6 = scmp.ne.s32.totalorder %s819_s27, %s629_s10  ;;  %p634_p10 = scmp.lt.u32.totalorder %s819_s27, %s871_s5 }
 0x25f   : > { %p635_p11 = scmp.lt.u32.totalorder %s633_s13, %s629_s10  ;;  %p637_p13 = scmp.lt.u32.totalorder %s629_s10, %s819_s27 }
 0x260   : > { %p631_p7 = pnand %p630_p6, %p773_p4 }
 0x261   : > { %p636_p12 = por %p635_p11, %p634_p10 }
 0x262   : > { %p632_p9 = pneg %p631_p7 }
 0x263   : > { %p638_p0 = por %p637_p13, %p636_p12 }
 0x265   : > { %p639_p1 = pnand %p638_p0, %p632_p9 }
 0x267   : > { %642 = shalt.err (!%p639_p1)
}
 0x268   : > { %553 = dma.vmem_to_hbm [thread:$0]  (%p773_p4), %s821_s17, 16, %s819_s27, %s435_s29  }
 0x269 PF: > { %p559_p2 = scmp.ge.s32.totalorder %s693_s23, 2  ;;  %s459_s16 = sand.u32 1, %s673_s18  }
 0x26a   : > { %s460_s24 = scalar_lea.sflag [#allocation4], %s459_s16 }
 0x26b   : > { %p556_p3 = pnand %p559_p2, %p780_p8 }
 0x26d   : > { %668 = dma.done.wait (!%p556_p3), %s460_s24, 16  }
 0x26e   : > { %670 = vsyncadd (!%p556_p3), %s460_s24, 4294967280  ;;  %s18_s23 = sadd.s32 1, %s693_s23   ;;  %s874_s18 = smov %s677_s19 }
 0x26f   : > { %p15_p5 = scmp.ge.s32.totalorder %s18_s23, 4   ;;  %s875_s19 = smov %s681_s20 }
 0x270   : > { %s876_s20 = smov %s786_s6  ;;  %s877_s21 = smov %s689_s22 }
 0x271   : > { %s878_s22 = smov %s880_s26  ;;  %17 = sbr.rel (!%p15_p5) target bundleno = 4 (0x4), region = 83 }
 0x278   :  { %464 = vsyncpa [#allocation4], 1 }
 0x279   :  { %466 = vsyncpa [#allocation4 + $0x1], 1 }

</bundles_post_ra>
